<compile_context>
chip_gen: v5e
topology: v5e:2x2
jax: 0.10.0
libtpu: 0.0.40
codegen_flags: <defaults>
</compile_context>

<pallas_src>
import functools
import numpy as np

import jax
import jax.numpy as jnp
from jax import lax
from jax.experimental import pallas as pl
from jax.experimental.pallas import tpu as pltpu


# ---------------------------------------------------------------------------
# fused diffusion forward + masked-MSE partial sums  (one kernel, grid=(B,))
# ---------------------------------------------------------------------------

def _fused_csdi_kernel(
    # SMEM scalars
    scal_ref,                                 # (B, 3) f32: gamma, sqrt(a), sqrt(1-a)
    # per-batch data blocks
    obs_ref, cm_ref, om_ref, ng_ref, nc_ref,  # (1, 1, N) each, f32
    side_ref,                                 # (1, S, N) bf16
    dproj_ref,                                # (1, C, 1) f32 diffusion-step projection column
    # weights (constant index maps -> resident in VMEM)
    w_in_ref, b_in_ref,
    w_mid_ref, b_mid_ref, w_cond_ref, b_cond_ref,
    w_out_ref, b_out_ref, w_o1_ref, b_o1_ref,
    w_o2_ref, b_o2_ref,
    # output
    stats_ref,                                # (1, 2, 128): row0 = sum(resid^2), row1 = sum(mask)
    *, C):
    b = pl.program_id(0)
    gamma = scal_ref[b, 0]
    sqrt_a = scal_ref[b, 1]
    sqrt_oma = scal_ref[b, 2]

    obs = obs_ref[0]                          # (1, N)
    cm = cm_ref[0]
    om = om_ref[0]

    # ---- blend gaussian + correlated noise, build diffusion-model inputs
    noise = gamma * ng_ref[0] + (1.0 - gamma) * nc_ref[0]
    noisy = sqrt_a * obs + sqrt_oma * noise
    cond_obs = cm * obs
    noisy_target = (1.0 - cm) * noisy

    # ---- input projection (Conv1d, Cin=2, k=1) + ReLU, done on the VPU
    w_in = w_in_ref[...]                                      # (C, 2)
    h = w_in[:, 0:1] * cond_obs + w_in[:, 1:2] * noisy_target + b_in_ref[...]
    h = jnp.maximum(h, 0.0)                                   # (C, N)

    # ---- residual block
    # TODO(synk): diff_CSDI's per-time / per-feature transformer sublayers were not
    # provided with the module source and are omitted here.
    y = (h + dproj_ref[0]).astype(jnp.bfloat16)                # add step-embedding projection
    y = jnp.dot(w_mid_ref[...], y, preferred_element_type=jnp.float32) + b_mid_ref[...]      # (2C, N)
    y = y + jnp.dot(w_cond_ref[...], side_ref[0],
                    preferred_element_type=jnp.float32) + b_cond_ref[...]
    gate = jax.nn.sigmoid(y[:C, :]) * jnp.tanh(y[C:, :])       # (C, N)
    z = jnp.dot(w_out_ref[...], gate.astype(jnp.bfloat16),
                preferred_element_type=jnp.float32) + b_out_ref[...]                         # (2C, N)
    skip = z[C:, :]                                            # single layer: /sqrt(1) == identity

    # ---- output projection
    out = jnp.dot(w_o1_ref[...], skip.astype(jnp.bfloat16),
                  preferred_element_type=jnp.float32) + b_o1_ref[...]
    out = jnp.maximum(out, 0.0)                                # (C, N)
    # final 1-channel conv as a sublane reduction (no 1-row MXU matmul, no masked store)
    pred = jnp.sum(w_o2_ref[...] * out, axis=0, keepdims=True) + b_o2_ref[...]               # (1, N)

    # ---- masked residual partial sums for the MSE loss
    target_mask = om - cm
    resid = (noise - pred) * target_mask
    sq = jnp.sum(resid * resid)
    cnt = jnp.sum(target_mask)
    row = lax.broadcasted_iota(jnp.int32, (1, 2, 128), 1)
    stats_ref[...] = (row == 0).astype(jnp.float32) * sq + (row == 1).astype(jnp.float32) * cnt


def fused_csdi_forward(params, consts, t_int, scal, obs, cmask, omask, ngauss, ncorr, side):
    B, _, N = obs.shape
    S = side.shape[1]
    cfg = consts['diff_cfg']
    C = cfg['channels']
    bf16 = jnp.bfloat16

    # Diffusion-step embedding MLP: depends only on t, so it is computed once,
    # batched and lane-dense, in XLA instead of as degenerate (·,1) matmuls
    # repeated per grid step.  Only the (B, C, 1) projection enters the kernel.
    demb = params['diff_table'][t_int]                                      # (B, Demb)
    e = jax.nn.silu(demb @ params['w_e1'].T + params['b_e1'])
    e = jax.nn.silu(e @ params['w_e2'].T + params['b_e2'])
    dproj = (e @ params['w_dp'].T + params['b_dp'])[..., None]              # (B, C, 1)

    def col(v):
        return v.reshape(-1, 1).astype(jnp.float32)

    data_spec = pl.BlockSpec((1, 1, N), lambda b: (b, 0, 0))

    def wspec(shape):
        return pl.BlockSpec(shape, lambda b: (0, 0))

    in_specs = [
        pl.BlockSpec(memory_space=pltpu.MemorySpace.SMEM),        # scal (B, 3)
        data_spec, data_spec, data_spec, data_spec, data_spec,    # obs, cm, om, ng, nc
        pl.BlockSpec((1, S, N), lambda b: (b, 0, 0)),             # side info (bf16)
        pl.BlockSpec((1, C, 1), lambda b: (b, 0, 0)),             # per-batch dproj column
        wspec((C, 2)), wspec((C, 1)),                             # w_in, b_in
        wspec((2 * C, C)), wspec((2 * C, 1)),                     # w_mid, b_mid
        wspec((2 * C, S)), wspec((2 * C, 1)),                     # w_cond, b_cond
        wspec((2 * C, C)), wspec((2 * C, 1)),                     # w_out, b_out
        wspec((C, C)), wspec((C, 1)),                             # w_o1, b_o1
        wspec((C, 1)), wspec((1, 1)),                             # w_o2 (col), b_o2
    ]

    grid_spec = pltpu.PrefetchScalarGridSpec(
        num_scalar_prefetch=0,
        grid=(B,),
        in_specs=in_specs,
        out_specs=pl.BlockSpec((1, 2, 128), lambda b: (b, 0, 0)),
    )

    return pl.pallas_call(
        functools.partial(_fused_csdi_kernel, C=C),
        grid_spec=grid_spec,
        out_shape=jax.ShapeDtypeStruct((B, 2, 128), jnp.float32),
        compiler_params=pltpu.CompilerParams(
            dimension_semantics=("parallel",)),   # one batch element per TensorCore
    )(
        scal,
        obs, cmask, omask, ngauss, ncorr, side, dproj,
        params['w_in'], col(params['b_in']),
        params['w_mid'].astype(bf16), col(params['b_mid']),
        params['w_cond'].astype(bf16), col(params['b_cond']),
        params['w_out'].astype(bf16), col(params['b_out']),
        params['w_o1'].astype(bf16), col(params['b_o1']),
        params['w_o2'].T.astype(jnp.float32), params['b_o2'].reshape(1, 1),
    )


# ---------------------------------------------------------------------------
# correlated (blue) noise: all tiles batched into one matmul kernel
# ---------------------------------------------------------------------------

def _corr_matmul_kernel(z_ref, lc_ref, o_ref):
    # z: (T, D), lc: (rows, D)  ->  o = z @ lc.T : (T, rows)
    o_ref[...] = lax.dot_general(
        z_ref[...], lc_ref[...], (((1,), (1,)), ((), ())),
        preferred_element_type=jnp.float32)


def generate_correlated_noise_2d(key, B, K, L, L_chol, tile_k, tile_l):
    """Equivalent of CSDI's generate_correlated_noise_2d: every tile uses fresh z and
    the full Cholesky factor, but only the rows that survive the crop are computed,
    and all tiles go through a single batched matmul kernel."""
    D_tile = tile_k * tile_l
    ntk = -(-K // tile_k)
    ntl = -(-L // tile_l)
    ntiles = ntk * ntl
    rows = (min(K, tile_k) if ntk == 1 else tile_k) * tile_l   # exact; no triangularity assumed

    z = jax.random.normal(key, (ntiles * B, D_tile), jnp.float32)
    corr = pl.pallas_call(
        _corr_matmul_kernel,
        out_shape=jax.ShapeDtypeStruct((ntiles * B, rows), jnp.float32),
    )(z, L_chol[:rows, :])
    corr = corr.reshape(ntk, ntl, B, rows // tile_l, tile_l)

    k_parts = []
    for i in range(ntk):
        ek = min((i + 1) * tile_k, K) - i * tile_k
        l_parts = []
        for j in range(ntl):
            el = min((j + 1) * tile_l, L) - j * tile_l
            l_parts.append(corr[i, j][:, :ek, :el])
        k_parts.append(jnp.concatenate(l_parts, axis=2) if ntl > 1 else l_parts[0])
    return jnp.concatenate(k_parts, axis=1) if ntk > 1 else k_parts[0]   # (B, K, L)


# ---------------------------------------------------------------------------
# plain-XLA glue (tiny tensors)
# ---------------------------------------------------------------------------

def time_embedding(pos, d_model):
    # sin on even columns / cos on odd columns, no redundant transcendentals
    B, L = pos.shape
    div_term = 1.0 / jnp.power(
        10000.0, jnp.arange(0, d_model, 2, dtype=jnp.float32) / d_model)
    ang = pos[:, :, None] * div_term[None, None, :]                 # (B, L, d_model//2)
    return jnp.stack([jnp.sin(ang), jnp.cos(ang)], axis=-1).reshape(B, L, d_model)


def get_gamma(t, num_steps, gamma_start, gamma_end, gamma_tau):
    x = gamma_start + (gamma_end - gamma_start) * (t / num_steps) ** gamma_tau
    return jax.nn.sigmoid(x)


def csdi_forecasting_forward(params, consts, batch, rng):
    """Reproduces CSDI_Forecasting.forward(batch, is_train=1)."""
    # ---- process_data: permute (B, L, K) -> (B, K, L)
    observed_data = jnp.transpose(batch['observed_data'], (0, 2, 1)).astype(jnp.float32)
    observed_mask = jnp.transpose(batch['observed_mask'], (0, 2, 1)).astype(jnp.float32)
    gt_mask = jnp.transpose(batch['gt_mask'], (0, 2, 1)).astype(jnp.float32)
    observed_tp = batch['timepoints'].astype(jnp.float32)
    B, K, L = observed_data.shape
    N = K * L

    # target_dim_base <= num_sample_features -> no feature-sampling path
    cond_mask = observed_mask * gt_mask            # get_test_pattern_mask

    # ---- side info built directly in (B, side_dim, K*L) layout, in bf16
    #      (no 4-D permute, half the HBM writeback and half the kernel DMA)
    Dt, Df = consts['emb_time_dim'], consts['emb_feature_dim']
    t_emb = time_embedding(observed_tp, Dt)                                    # (B, L, Dt)
    t_part = jnp.broadcast_to(
        jnp.transpose(t_emb, (0, 2, 1))[:, :, None, :], (B, Dt, K, L)).astype(jnp.bfloat16)
    f_part = jnp.broadcast_to(
        params['embed_w'].T[None, :, :, None], (B, Df, K, L)).astype(jnp.bfloat16)
    side_info = jnp.concatenate(
        [t_part, f_part, cond_mask[:, None].astype(jnp.bfloat16)], axis=1)
    side_info = side_info.reshape(B, Dt + Df + 1, N)

    # ---- calc_loss (is_train == 1): per-batch diffusion step + noises
    k_t, k_g, k_c = jax.random.split(rng, 3)
    t_int = jax.random.randint(k_t, (B,), 0, consts['num_steps'], dtype=jnp.int32)
    current_alpha = consts['alpha'][t_int]                                     # (B,)
    gamma = get_gamma(t_int.astype(jnp.float32), consts['num_steps'],
                      consts['gamma_start'], consts['gamma_end'], consts['gamma_tau'])
    scal = jnp.stack([gamma, jnp.sqrt(current_alpha), jnp.sqrt(1.0 - current_alpha)],
                     axis=1).astype(jnp.float32)                               # (B, 3) -> SMEM

    noise_gauss = jax.random.normal(k_g, (B, K, L), jnp.float32)
    noise_corr = generate_correlated_noise_2d(
        k_c, B, K, L, params['L_chol'], consts['tile_k'], consts['tile_l'])

    # TODO(synk): rectify_mapping uses scipy.optimize.linear_sum_assignment (Hungarian
    # algorithm) with no TPU equivalent; this config sets use_rectified_mapping=False
    # (a supported option of the module).

    stats = fused_csdi_forward(
        params, consts, t_int, scal,
        observed_data.reshape(B, 1, N), cond_mask.reshape(B, 1, N),
        observed_mask.reshape(B, 1, N), noise_gauss.reshape(B, 1, N),
        noise_corr.reshape(B, 1, N), side_info)

    sq = jnp.sum(stats[:, 0, 0])
    cnt = jnp.sum(stats[:, 1, 0])
    # loss = sum(residual^2) / (num_eval if num_eval > 0 else 1)
    return sq / jnp.where(cnt > 0, cnt, 1.0)


# ---------------------------- parameter setup -------------------------------

def init_params(key, consts):
    cfg = consts['diff_cfg']
    C = cfg['channels']
    Demb = cfg['diffusion_embedding_dim']
    side_dim = consts['side_dim']
    input_dim = 2                                   # conditional model
    K = consts['target_dim']
    ks = jax.random.split(key, 12)

    def dense(k, out_d, in_d):
        return jax.random.normal(k, (out_d, in_d), jnp.float32) / np.sqrt(in_d)

    half = Demb // 2
    steps = np.arange(consts['num_steps'], dtype=np.float32)[:, None]
    freqs = (10.0 ** (np.arange(half, dtype=np.float32) / (half - 1) * 4.0))[None, :]
    table = np.concatenate([np.sin(steps * freqs), np.cos(steps * freqs)], axis=1)

    D_tile = consts['tile_k'] * consts['tile_l']
    # TODO(synk): the original loads a precomputed blue-noise Cholesky factor from a
    # .pt file; here we build a deterministic lower-triangular stand-in factor.
    A = jax.random.normal(ks[11], (D_tile, D_tile), jnp.float32) * 0.05
    L_chol = jnp.tril(A, -1) + jnp.eye(D_tile, dtype=jnp.float32)

    return {
        'embed_w': jax.random.normal(ks[0], (K, consts['emb_feature_dim']), jnp.float32),
        'diff_table': jnp.asarray(table, jnp.float32),
        'w_e1': dense(ks[1], Demb, Demb), 'b_e1': jnp.zeros((Demb,), jnp.float32),
        'w_e2': dense(ks[2], Demb, Demb), 'b_e2': jnp.zeros((Demb,), jnp.float32),
        'w_in': dense(ks[3], C, input_dim), 'b_in': jnp.zeros((C,), jnp.float32),
        'w_dp': dense(ks[4], C, Demb), 'b_dp': jnp.zeros((C,), jnp.float32),
        'w_mid': dense(ks[5], 2 * C, C), 'b_mid': jnp.zeros((2 * C,), jnp.float32),
        'w_cond': dense(ks[6], 2 * C, side_dim), 'b_cond': jnp.zeros((2 * C,), jnp.float32),
        'w_out': dense(ks[7], 2 * C, C), 'b_out': jnp.zeros((2 * C,), jnp.float32),
        'w_o1': dense(ks[8], C, C), 'b_o1': jnp.zeros((C,), jnp.float32),
        'w_o2': jnp.zeros((1, C), jnp.float32),   # zero-init output proj (CSDI convention)
        'b_o2': jnp.zeros((1,), jnp.float32),
        'L_chol': L_chol,
    }


# --------------------------------- main -------------------------------------

if __name__ == "__main__":
    # synthetic config (mirrors the module's config dict)
    num_steps = 10
    beta = np.linspace(0.0001 ** 0.5, 0.5 ** 0.5, num_steps) ** 2   # 'quad' schedule
    alpha_hat = 1.0 - beta
    alpha = np.cumprod(alpha_hat)

    emb_time_dim, emb_feature_dim = 16, 16
    target_dim = 8                                 # K (features)
    consts = {
        'emb_time_dim': emb_time_dim,
        'emb_feature_dim': emb_feature_dim,
        'side_dim': emb_time_dim + emb_feature_dim + 1,   # conditional (+1 mask channel)
        'target_dim': target_dim,
        'num_steps': num_steps,
        'alpha': jnp.asarray(alpha, jnp.float32),
        'tile_k': 100,
        'tile_l': 5,
        'gamma_start': 0.0, 'gamma_end': 3.0, 'gamma_tau': 0.2,
        'diff_cfg': {'channels': 32, 'diffusion_embedding_dim': 32},
    }

    key = jax.random.PRNGKey(0)
    kp, kd, km, kg, kr = jax.random.split(key, 5)
    params = init_params(kp, consts)

    B, L, K = 2, 16, target_dim      # N = K*L = 128 (lane-dense)
    batch = {
        'observed_data': jax.random.normal(kd, (B, L, K), jnp.float32),
        'observed_mask': (jax.random.uniform(km, (B, L, K)) > 0.2).astype(jnp.float32),
        'gt_mask': (jax.random.uniform(kg, (B, L, K)) > 0.5).astype(jnp.float32),
        'timepoints': jnp.broadcast_to(jnp.arange(L, dtype=jnp.float32)[None], (B, L)),
    }

    fwd = jax.jit(lambda p, b, r: csdi_forecasting_forward(p, consts, b, r))
    loss = fwd(params, batch, kr)
    loss = jax.block_until_ready(loss)
    assert jnp.isfinite(loss)
    print("KERNEL_OK")
</pallas_src>

<mosaic_0001>
module attributes {stable_mosaic.version = 11 : i64} {
  func.func @_corr_matmul_kernel(%arg0: memref<8x500xf32, #tpu.memory_space<vmem>>, %arg1: memref<40x500xf32, #tpu.memory_space<vmem>>, %arg2: memref<8x40xf32, #tpu.memory_space<vmem>>) attributes {dimension_semantics = [], scalar_prefetch = 0 : i64, scratch_operands = 0 : i64, tpu.core_type = #tpu.core_type<tc>} {
    %c0 = arith.constant 0 : index
    %c0_0 = arith.constant 0 : index
    %0 = vector.load %arg0[%c0, %c0_0] : memref<8x500xf32, #tpu.memory_space<vmem>>, vector<8x500xf32>
    %c0_1 = arith.constant 0 : index
    %c0_2 = arith.constant 0 : index
    %1 = vector.load %arg1[%c0_1, %c0_2] : memref<40x500xf32, #tpu.memory_space<vmem>>, vector<40x500xf32>
    %cst = arith.constant dense<0.000000e+00> : vector<8x40xf32>
    %2 = tpu.matmul %0, %1, %cst {dimension_numbers = #tpu.dot_dimension_numbers<[1], [1], [0], [0], [0, 0, 1, 0], [], []>} : vector<8x500xf32>, vector<40x500xf32>, vector<8x40xf32> -> vector<8x40xf32>
    %c0_3 = arith.constant 0 : index
    %c0_4 = arith.constant 0 : index
    %3 = vector.load %arg2[%c0_3, %c0_4] : memref<8x40xf32, #tpu.memory_space<vmem>>, vector<8x40xf32>
    tpu.vector_store %arg2[%c0_3, %c0_4], %2 {strides = array<i32>} : memref<8x40xf32, #tpu.memory_space<vmem>>, vector<8x40xf32>,
    return
  }
}

module attributes {stable_mosaic.version = 11 : i64} {
  func.func @_fused_csdi_kernel(%arg0: i32, %arg1: memref<2x3xf32, #tpu.memory_space<smem>>, %arg2: memref<1x1x128xf32, #tpu.memory_space<vmem>>, %arg3: memref<1x1x128xf32, #tpu.memory_space<vmem>>, %arg4: memref<1x1x128xf32, #tpu.memory_space<vmem>>, %arg5: memref<1x1x128xf32, #tpu.memory_space<vmem>>, %arg6: memref<1x1x128xf32, #tpu.memory_space<vmem>>, %arg7: memref<1x33x128xbf16, #tpu.memory_space<vmem>>, %arg8: memref<1x32x1xf32, #tpu.memory_space<vmem>>, %arg9: memref<32x2xf32, #tpu.memory_space<vmem>>, %arg10: memref<32x1xf32, #tpu.memory_space<vmem>>, %arg11: memref<64x32xbf16, #tpu.memory_space<vmem>>, %arg12: memref<64x1xf32, #tpu.memory_space<vmem>>, %arg13: memref<64x33xbf16, #tpu.memory_space<vmem>>, %arg14: memref<64x1xf32, #tpu.memory_space<vmem>>, %arg15: memref<64x32xbf16, #tpu.memory_space<vmem>>, %arg16: memref<64x1xf32, #tpu.memory_space<vmem>>, %arg17: memref<32x32xbf16, #tpu.memory_space<vmem>>, %arg18: memref<32x1xf32, #tpu.memory_space<vmem>>, %arg19: memref<32x1xf32, #tpu.memory_space<vmem>>, %arg20: memref<1x1xf32, #tpu.memory_space<vmem>>, %arg21: memref<1x2x128xf32, #tpu.memory_space<vmem>>) attributes {dimension_semantics = [#tpu.dimension_semantics<parallel>], iteration_bounds = array<i64: 2>, scalar_prefetch = 0 : i64, scratch_operands = 0 : i64, tpu.core_type = #tpu.core_type<tc>, window_params = [{transform_indices = @transform_0, window_bounds = array<i64: 2, 3>}, {transform_indices = @transform_1, window_bounds = array<i64: 1, 1, 128>}, {transform_indices = @transform_2, window_bounds = array<i64: 1, 1, 128>}, {transform_indices = @transform_3, window_bounds = array<i64: 1, 1, 128>}, {transform_indices = @transform_4, window_bounds = array<i64: 1, 1, 128>}, {transform_indices = @transform_5, window_bounds = array<i64: 1, 1, 128>}, {transform_indices = @transform_6, window_bounds = array<i64: 1, 33, 128>}, {transform_indices = @transform_7, window_bounds = array<i64: 1, 32, 1>}, {pipeline_mode = #tpu.pipeline_mode<synchronous>, transform_indices = @transform_8, window_bounds = array<i64: 32, 2>}, {pipeline_mode = #tpu.pipeline_mode<synchronous>, transform_indices = @transform_9, window_bounds = array<i64: 32, 1>}, {pipeline_mode = #tpu.pipeline_mode<synchronous>, transform_indices = @transform_10, window_bounds = array<i64: 64, 32>}, {pipeline_mode = #tpu.pipeline_mode<synchronous>, transform_indices = @transform_11, window_bounds = array<i64: 64, 1>}, {pipeline_mode = #tpu.pipeline_mode<synchronous>, transform_indices = @transform_12, window_bounds = array<i64: 64, 33>}, {pipeline_mode = #tpu.pipeline_mode<synchronous>, transform_indices = @transform_13, window_bounds = array<i64: 64, 1>}, {pipeline_mode = #tpu.pipeline_mode<synchronous>, transform_indices = @transform_14, window_bounds = array<i64: 64, 32>}, {pipeline_mode = #tpu.pipeline_mode<synchronous>, transform_indices = @transform_15, window_bounds = array<i64: 64, 1>}, {pipeline_mode = #tpu.pipeline_mode<synchronous>, transform_indices = @transform_16, window_bounds = array<i64: 32, 32>}, {pipeline_mode = #tpu.pipeline_mode<synchronous>, transform_indices = @transform_17, window_bounds = array<i64: 32, 1>}, {pipeline_mode = #tpu.pipeline_mode<synchronous>, transform_indices = @transform_18, window_bounds = array<i64: 32, 1>}, {pipeline_mode = #tpu.pipeline_mode<synchronous>, transform_indices = @transform_19, window_bounds = array<i64: 1, 1>}, {transform_indices = @transform_20, window_bounds = array<i64: 1, 2, 128>}]} {
    %0 = arith.index_cast %arg0 : i32 to index
    %c0 = arith.constant 0 : index
    %1 = memref.load %arg1[%0, %c0] : memref<2x3xf32, #tpu.memory_space<smem>>
    %2 = arith.index_cast %arg0 : i32 to index
    %c1 = arith.constant 1 : index
    %3 = memref.load %arg1[%2, %c1] : memref<2x3xf32, #tpu.memory_space<smem>>
    %4 = arith.index_cast %arg0 : i32 to index
    %c2 = arith.constant 2 : index
    %5 = memref.load %arg1[%4, %c2] : memref<2x3xf32, #tpu.memory_space<smem>>
    %c0_0 = arith.constant 0 : index
    %c0_1 = arith.constant 0 : index
    %c0_2 = arith.constant 0 : index
    %6 = vector.load %arg2[%c0_0, %c0_1, %c0_2] : memref<1x1x128xf32, #tpu.memory_space<vmem>>, vector<1x1x128xf32>
    %7 = vector.shape_cast %6 : vector<1x1x128xf32> to vector<1x128xf32>
    %c0_3 = arith.constant 0 : index
    %c0_4 = arith.constant 0 : index
    %c0_5 = arith.constant 0 : index
    %8 = vector.load %arg3[%c0_3, %c0_4, %c0_5] : memref<1x1x128xf32, #tpu.memory_space<vmem>>, vector<1x1x128xf32>
    %9 = vector.shape_cast %8 : vector<1x1x128xf32> to vector<1x128xf32>
    %c0_6 = arith.constant 0 : index
    %c0_7 = arith.constant 0 : index
    %c0_8 = arith.constant 0 : index
    %10 = vector.load %arg4[%c0_6, %c0_7, %c0_8] : memref<1x1x128xf32, #tpu.memory_space<vmem>>, vector<1x1x128xf32>
    %11 = vector.shape_cast %10 : vector<1x1x128xf32> to vector<1x128xf32>
    %c0_9 = arith.constant 0 : index
    %c0_10 = arith.constant 0 : index
    %c0_11 = arith.constant 0 : index
    %12 = vector.load %arg5[%c0_9, %c0_10, %c0_11] : memref<1x1x128xf32, #tpu.memory_space<vmem>>, vector<1x1x128xf32>
    %13 = vector.shape_cast %12 : vector<1x1x128xf32> to vector<1x128xf32>
    %14 = vector.broadcast %1 : f32 to vector<1x128xf32>
    %15 = arith.mulf %14, %13 : vector<1x128xf32>
    %cst = arith.constant 1.000000e+00 : f32
    %16 = arith.subf %cst, %1 : f32
    %c0_12 = arith.constant 0 : index
    %c0_13 = arith.constant 0 : index
    %c0_14 = arith.constant 0 : index
    %17 = vector.load %arg6[%c0_12, %c0_13, %c0_14] : memref<1x1x128xf32, #tpu.memory_space<vmem>>, vector<1x1x128xf32>
    %18 = vector.shape_cast %17 : vector<1x1x128xf32> to vector<1x128xf32>
    %19 = vector.broadcast %16 : f32 to vector<1x128xf32>
    %20 = arith.mulf %19, %18 : vector<1x128xf32>
    %21 = arith.addf %15, %20 : vector<1x128xf32>
    %22 = vector.broadcast %3 : f32 to vector<1x128xf32>
    %23 = arith.mulf %22, %7 : vector<1x128xf32>
    %24 = vector.broadcast %5 : f32 to vector<1x128xf32>
    %25 = arith.mulf %24, %21 : vector<1x128xf32>
    %26 = arith.addf %23, %25 : vector<1x128xf32>
    %27 = arith.mulf %9, %7 : vector<1x128xf32>
    %cst_15 = arith.constant 1.000000e+00 : f32
    %28 = vector.broadcast %cst_15 : f32 to vector<1x128xf32>
    %29 = arith.subf %28, %9 : vector<1x128xf32>
    %30 = arith.mulf %29, %26 : vector<1x128xf32>
    %c0_16 = arith.constant 0 : index
    %c0_17 = arith.constant 0 : index
    %31 = vector.load %arg9[%c0_16, %c0_17] : memref<32x2xf32, #tpu.memory_space<vmem>>, vector<32x2xf32>
    %32 = vector.extract_strided_slice %31 {offsets = [0, 0], sizes = [32, 1], strides = [1, 1]} : vector<32x2xf32> to vector<32x1xf32>
    %33 = vector.broadcast %32 : vector<32x1xf32> to vector<32x128xf32>
    %34 = vector.broadcast %27 : vector<1x128xf32> to vector<32x128xf32>
    %35 = arith.mulf %33, %34 : vector<32x128xf32>
    %36 = vector.extract_strided_slice %31 {offsets = [0, 1], sizes = [32, 1], strides = [1, 1]} : vector<32x2xf32> to vector<32x1xf32>
    %37 = vector.broadcast %36 : vector<32x1xf32> to vector<32x128xf32>
    %38 = vector.broadcast %30 : vector<1x128xf32> to vector<32x128xf32>
    %39 = arith.mulf %37, %38 : vector<32x128xf32>
    %40 = arith.addf %35, %39 : vector<32x128xf32>
    %c0_18 = arith.constant 0 : index
    %c0_19 = arith.constant 0 : index
    %41 = vector.load %arg10[%c0_18, %c0_19] : memref<32x1xf32, #tpu.memory_space<vmem>>, vector<32x1xf32>
    %42 = vector.broadcast %41 : vector<32x1xf32> to vector<32x128xf32>
    %43 = arith.addf %40, %42 : vector<32x128xf32>
    %cst_20 = arith.constant 0.000000e+00 : f32
    %44 = vector.broadcast %cst_20 : f32 to vector<32x128xf32>
    %45 = arith.maximumf %43, %44 : vector<32x128xf32>
    %c0_21 = arith.constant 0 : index
    %c0_22 = arith.constant 0 : index
    %c0_23 = arith.constant 0 : index
    %46 = vector.load %arg8[%c0_21, %c0_22, %c0_23] : memref<1x32x1xf32, #tpu.memory_space<vmem>>, vector<1x32x1xf32>
    %47 = vector.shape_cast %46 : vector<1x32x1xf32> to vector<32x1xf32>
    %48 = vector.broadcast %47 : vector<32x1xf32> to vector<32x128xf32>
    %49 = arith.addf %45, %48 : vector<32x128xf32>
    %50 = arith.truncf %49 : vector<32x128xf32> to vector<32x128xbf16>
    %c0_24 = arith.constant 0 : index
    %c0_25 = arith.constant 0 : index
    %51 = vector.load %arg11[%c0_24, %c0_25] : memref<64x32xbf16, #tpu.memory_space<vmem>>, vector<64x32xbf16>
    %cst_26 = arith.constant dense<0.000000e+00> : vector<64x128xf32>
    %52 = tpu.matmul %51, %50, %cst_26 {dimension_numbers = #tpu.dot_dimension_numbers<[1], [0], [0], [1], [0, 0, 1, 1], [], []>} : vector<64x32xbf16>, vector<32x128xbf16>, vector<64x128xf32> -> vector<64x128xf32>
    %c0_27 = arith.constant 0 : index
    %c0_28 = arith.constant 0 : index
    %53 = vector.load %arg12[%c0_27, %c0_28] : memref<64x1xf32, #tpu.memory_space<vmem>>, vector<64x1xf32>
    %54 = vector.broadcast %53 : vector<64x1xf32> to vector<64x128xf32>
    %55 = arith.addf %52, %54 : vector<64x128xf32>
    %c0_29 = arith.constant 0 : index
    %c0_30 = arith.constant 0 : index
    %56 = vector.load %arg13[%c0_29, %c0_30] : memref<64x33xbf16, #tpu.memory_space<vmem>>, vector<64x33xbf16>
    %c0_31 = arith.constant 0 : index
    %c0_32 = arith.constant 0 : index
    %c0_33 = arith.constant 0 : index
    %57 = vector.load %arg7[%c0_31, %c0_32, %c0_33] : memref<1x33x128xbf16, #tpu.memory_space<vmem>>, vector<1x33x128xbf16>
    %58 = vector.shape_cast %57 : vector<1x33x128xbf16> to vector<33x128xbf16>
    %cst_34 = arith.constant dense<0.000000e+00> : vector<64x128xf32>
    %59 = tpu.matmul %56, %58, %cst_34 {dimension_numbers = #tpu.dot_dimension_numbers<[1], [0], [0], [1], [0, 0, 1, 1], [], []>} : vector<64x33xbf16>, vector<33x128xbf16>, vector<64x128xf32> -> vector<64x128xf32>
    %60 = arith.addf %55, %59 : vector<64x128xf32>
    %c0_35 = arith.constant 0 : index
    %c0_36 = arith.constant 0 : index
    %61 = vector.load %arg14[%c0_35, %c0_36] : memref<64x1xf32, #tpu.memory_space<vmem>>, vector<64x1xf32>
    %62 = vector.broadcast %61 : vector<64x1xf32> to vector<64x128xf32>
    %63 = arith.addf %60, %62 : vector<64x128xf32>
    %64 = vector.extract_strided_slice %63 {offsets = [0, 0], sizes = [32, 128], strides = [1, 1]} : vector<64x128xf32> to vector<32x128xf32>
    %65 = arith.negf %64 : vector<32x128xf32>
    %66 = math.exp %65 : vector<32x128xf32>
    %cst_37 = arith.constant 1.000000e+00 : f32
    %67 = vector.broadcast %cst_37 : f32 to vector<32x128xf32>
    %68 = arith.addf %67, %66 : vector<32x128xf32>
    %69 = arith.divf %67, %68 : vector<32x128xf32>
    %70 = vector.extract_strided_slice %63 {offsets = [32, 0], sizes = [32, 128], strides = [1, 1]} : vector<64x128xf32> to vector<32x128xf32>
    %71 = math.tanh %70 : vector<32x128xf32>
    %72 = arith.mulf %69, %71 : vector<32x128xf32>
    %c0_38 = arith.constant 0 : index
    %c0_39 = arith.constant 0 : index
    %73 = vector.load %arg15[%c0_38, %c0_39] : memref<64x32xbf16, #tpu.memory_space<vmem>>, vector<64x32xbf16>
    %74 = arith.truncf %72 : vector<32x128xf32> to vector<32x128xbf16>
    %cst_40 = arith.constant dense<0.000000e+00> : vector<64x128xf32>
    %75 = tpu.matmul %73, %74, %cst_40 {dimension_numbers = #tpu.dot_dimension_numbers<[1], [0], [0], [1], [0, 0, 1, 1], [], []>} : vector<64x32xbf16>, vector<32x128xbf16>, vector<64x128xf32> -> vector<64x128xf32>
    %c0_41 = arith.constant 0 : index
    %c0_42 = arith.constant 0 : index
    %76 = vector.load %arg16[%c0_41, %c0_42] : memref<64x1xf32, #tpu.memory_space<vmem>>, vector<64x1xf32>
    %77 = vector.broadcast %76 : vector<64x1xf32> to vector<64x128xf32>
    %78 = arith.addf %75, %77 : vector<64x128xf32>
    %79 = vector.extract_strided_slice %78 {offsets = [32, 0], sizes = [32, 128], strides = [1, 1]} : vector<64x128xf32> to vector<32x128xf32>
    %c0_43 = arith.constant 0 : index
    %c0_44 = arith.constant 0 : index
    %80 = vector.load %arg17[%c0_43, %c0_44] : memref<32x32xbf16, #tpu.memory_space<vmem>>, vector<32x32xbf16>
    %81 = arith.truncf %79 : vector<32x128xf32> to vector<32x128xbf16>
    %cst_45 = arith.constant dense<0.000000e+00> : vector<32x128xf32>
    %82 = tpu.matmul %80, %81, %cst_45 {dimension_numbers = #tpu.dot_dimension_numbers<[1], [0], [0], [1], [0, 0, 1, 1], [], []>} : vector<32x32xbf16>, vector<32x128xbf16>, vector<32x128xf32> -> vector<32x128xf32>
    %c0_46 = arith.constant 0 : index
    %c0_47 = arith.constant 0 : index
    %83 = vector.load %arg18[%c0_46, %c0_47] : memref<32x1xf32, #tpu.memory_space<vmem>>, vector<32x1xf32>
    %84 = vector.broadcast %83 : vector<32x1xf32> to vector<32x128xf32>
    %85 = arith.addf %82, %84 : vector<32x128xf32>
    %cst_48 = arith.constant 0.000000e+00 : f32
    %86 = vector.broadcast %cst_48 : f32 to vector<32x128xf32>
    %87 = arith.maximumf %85, %86 : vector<32x128xf32>
    %c0_49 = arith.constant 0 : index
    %c0_50 = arith.constant 0 : index
    %88 = vector.load %arg19[%c0_49, %c0_50] : memref<32x1xf32, #tpu.memory_space<vmem>>, vector<32x1xf32>
    %89 = vector.broadcast %88 : vector<32x1xf32> to vector<32x128xf32>
    %90 = arith.mulf %89, %87 : vector<32x128xf32>
    %cst_51 = arith.constant dense<0.000000e+00> : vector<128xf32>
    %91 = vector.multi_reduction <add>, %90, %cst_51 [0] : vector<32x128xf32> to vector<128xf32>
    %92 = vector.shape_cast %91 : vector<128xf32> to vector<1x128xf32>
    %c0_52 = arith.constant 0 : index
    %c0_53 = arith.constant 0 : index
    %93 = vector.load %arg20[%c0_52, %c0_53] : memref<1x1xf32, #tpu.memory_space<vmem>>, vector<1x1xf32>
    %94 = vector.broadcast %93 : vector<1x1xf32> to vector<1x128xf32>
    %95 = arith.addf %92, %94 : vector<1x128xf32>
    %96 = arith.subf %11, %9 : vector<1x128xf32>
    %97 = arith.subf %21, %95 : vector<1x128xf32>
    %98 = arith.mulf %97, %96 : vector<1x128xf32>
    %99 = arith.mulf %98, %98 : vector<1x128xf32>
    %100 = vector.shape_cast %99 : vector<1x128xf32> to vector<1x1x128xf32>
    %cst_54 = arith.constant dense<0.000000e+00> : vector<1xf32>
    %101 = vector.multi_reduction <add>, %100, %cst_54 [1, 2] : vector<1x1x128xf32> to vector<1xf32>
    %102 = vector.shape_cast %101 : vector<1xf32> to vector<1x1x1xf32>
    %103 = vector.extract %102[0, 0, 0] : f32 from vector<1x1x1xf32>
    %104 = vector.shape_cast %96 : vector<1x128xf32> to vector<1x1x128xf32>
    %cst_55 = arith.constant dense<0.000000e+00> : vector<1xf32>
    %105 = vector.multi_reduction <add>, %104, %cst_55 [1, 2] : vector<1x1x128xf32> to vector<1xf32>
    %106 = vector.shape_cast %105 : vector<1xf32> to vector<1x1x1xf32>
    %107 = vector.extract %106[0, 0, 0] : f32 from vector<1x1x1xf32>
    %108 = tpu.iota {dimensions = array<i32: 1>} : vector<1x2x128xi32>
    %c0_i32 = arith.constant 0 : i32
    %109 = vector.broadcast %c0_i32 : i32 to vector<1x2x128xi32>
    %110 = arith.cmpi eq, %108, %109 : vector<1x2x128xi32>
    %111 = arith.extui %110 : vector<1x2x128xi1> to vector<1x2x128xi32>
    %112 = arith.sitofp %111 : vector<1x2x128xi32> to vector<1x2x128xf32>
    %113 = vector.broadcast %103 : f32 to vector<1x2x128xf32>
    %114 = arith.mulf %112, %113 : vector<1x2x128xf32>
    %c1_i32 = arith.constant 1 : i32
    %115 = vector.broadcast %c1_i32 : i32 to vector<1x2x128xi32>
    %116 = arith.cmpi eq, %108, %115 : vector<1x2x128xi32>
    %117 = arith.extui %116 : vector<1x2x128xi1> to vector<1x2x128xi32>
    %118 = arith.sitofp %117 : vector<1x2x128xi32> to vector<1x2x128xf32>
    %119 = vector.broadcast %107 : f32 to vector<1x2x128xf32>
    %120 = arith.mulf %118, %119 : vector<1x2x128xf32>
    %121 = arith.addf %114, %120 : vector<1x2x128xf32>
    %c0_56 = arith.constant 0 : index
    %c0_57 = arith.constant 0 : index
    %c0_58 = arith.constant 0 : index
    %122 = vector.load %arg21[%c0_56, %c0_57, %c0_58] : memref<1x2x128xf32, #tpu.memory_space<vmem>>, vector<1x2x128xf32>
    tpu.vector_store %arg21[%c0_56, %c0_57, %c0_58], %121 {strides = array<i32>} : memref<1x2x128xf32, #tpu.memory_space<vmem>>, vector<1x2x128xf32>,
    return
  }
  func.func @transform_0(%arg0: i32) -> (i32, i32) {
    %c0_i32 = arith.constant 0 : i32
    %c0_i32_0 = arith.constant 0 : i32
    %c0_i32_1 = arith.constant 0 : i32
    return %c0_i32, %c0_i32_0 : i32, i32
  }
  func.func @transform_1(%arg0: i32) -> (i32, i32, i32) {
    %c0_i32 = arith.constant 0 : i32
    %c0_i32_0 = arith.constant 0 : i32
    %c0_i32_1 = arith.constant 0 : i32
    return %arg0, %c0_i32, %c0_i32_0 : i32, i32, i32
  }
  func.func @transform_2(%arg0: i32) -> (i32, i32, i32) {
    %c0_i32 = arith.constant 0 : i32
    %c0_i32_0 = arith.constant 0 : i32
    %c0_i32_1 = arith.constant 0 : i32
    return %arg0, %c0_i32, %c0_i32_0 : i32, i32, i32
  }
  func.func @transform_3(%arg0: i32) -> (i32, i32, i32) {
    %c0_i32 = arith.constant 0 : i32
    %c0_i32_0 = arith.constant 0 : i32
    %c0_i32_1 = arith.constant 0 : i32
    return %arg0, %c0_i32, %c0_i32_0 : i32, i32, i32
  }
  func.func @transform_4(%arg0: i32) -> (i32, i32, i32) {
    %c0_i32 = arith.constant 0 : i32
    %c0_i32_0 = arith.constant 0 : i32
    %c0_i32_1 = arith.constant 0 : i32
    return %arg0, %c0_i32, %c0_i32_0 : i32, i32, i32
  }
  func.func @transform_5(%arg0: i32) -> (i32, i32, i32) {
    %c0_i32 = arith.constant 0 : i32
    %c0_i32_0 = arith.constant 0 : i32
    %c0_i32_1 = arith.constant 0 : i32
    return %arg0, %c0_i32, %c0_i32_0 : i32, i32, i32
  }
  func.func @transform_6(%arg0: i32) -> (i32, i32, i32) {
    %c0_i32 = arith.constant 0 : i32
    %c0_i32_0 = arith.constant 0 : i32
    %c0_i32_1 = arith.constant 0 : i32
    return %arg0, %c0_i32, %c0_i32_0 : i32, i32, i32
  }
  func.func @transform_7(%arg0: i32) -> (i32, i32, i32) {
    %c0_i32 = arith.constant 0 : i32
    %c0_i32_0 = arith.constant 0 : i32
    %c0_i32_1 = arith.constant 0 : i32
    return %arg0, %c0_i32, %c0_i32_0 : i32, i32, i32
  }
  func.func @transform_8(%arg0: i32) -> (i32, i32) {
    %c0_i32 = arith.constant 0 : i32
    %c0_i32_0 = arith.constant 0 : i32
    %c0_i32_1 = arith.constant 0 : i32
    return %c0_i32, %c0_i32_0 : i32, i32
  }
  func.func @transform_9(%arg0: i32) -> (i32, i32) {
    %c0_i32 = arith.constant 0 : i32
    %c0_i32_0 = arith.constant 0 : i32
    %c0_i32_1 = arith.constant 0 : i32
    return %c0_i32, %c0_i32_0 : i32, i32
  }
  func.func @transform_10(%arg0: i32) -> (i32, i32) {
    %c0_i32 = arith.constant 0 : i32
    %c0_i32_0 = arith.constant 0 : i32
    %c0_i32_1 = arith.constant 0 : i32
    return %c0_i32, %c0_i32_0 : i32, i32
  }
  func.func @transform_11(%arg0: i32) -> (i32, i32) {
    %c0_i32 = arith.constant 0 : i32
    %c0_i32_0 = arith.constant 0 : i32
    %c0_i32_1 = arith.constant 0 : i32
    return %c0_i32, %c0_i32_0 : i32, i32
  }
  func.func @transform_12(%arg0: i32) -> (i32, i32) {
    %c0_i32 = arith.constant 0 : i32
    %c0_i32_0 = arith.constant 0 : i32
    %c0_i32_1 = arith.constant 0 : i32
    return %c0_i32, %c0_i32_0 : i32, i32
  }
  func.func @transform_13(%arg0: i32) -> (i32, i32) {
    %c0_i32 = arith.constant 0 : i32
    %c0_i32_0 = arith.constant 0 : i32
    %c0_i32_1 = arith.constant 0 : i32
    return %c0_i32, %c0_i32_0 : i32, i32
  }
  func.func @transform_14(%arg0: i32) -> (i32, i32) {
    %c0_i32 = arith.constant 0 : i32
    %c0_i32_0 = arith.constant 0 : i32
    %c0_i32_1 = arith.constant 0 : i32
    return %c0_i32, %c0_i32_0 : i32, i32
  }
  func.func @transform_15(%arg0: i32) -> (i32, i32) {
    %c0_i32 = arith.constant 0 : i32
    %c0_i32_0 = arith.constant 0 : i32
    %c0_i32_1 = arith.constant 0 : i32
    return %c0_i32, %c0_i32_0 : i32, i32
  }
  func.func @transform_16(%arg0: i32) -> (i32, i32) {
    %c0_i32 = arith.constant 0 : i32
    %c0_i32_0 = arith.constant 0 : i32
    %c0_i32_1 = arith.constant 0 : i32
    return %c0_i32, %c0_i32_0 : i32, i32
  }
  func.func @transform_17(%arg0: i32) -> (i32, i32) {
    %c0_i32 = arith.constant 0 : i32
    %c0_i32_0 = arith.constant 0 : i32
    %c0_i32_1 = arith.constant 0 : i32
    return %c0_i32, %c0_i32_0 : i32, i32
  }
  func.func @transform_18(%arg0: i32) -> (i32, i32) {
    %c0_i32 = arith.constant 0 : i32
    %c0_i32_0 = arith.constant 0 : i32
    %c0_i32_1 = arith.constant 0 : i32
    return %c0_i32, %c0_i32_0 : i32, i32
  }
  func.func @transform_19(%arg0: i32) -> (i32, i32) {
    %c0_i32 = arith.constant 0 : i32
    %c0_i32_0 = arith.constant 0 : i32
    %c0_i32_1 = arith.constant 0 : i32
    return %c0_i32, %c0_i32_0 : i32, i32
  }
  func.func @transform_20(%arg0: i32) -> (i32, i32, i32) {
    %c0_i32 = arith.constant 0 : i32
    %c0_i32_0 = arith.constant 0 : i32
    %c0_i32_1 = arith.constant 0 : i32
    return %arg0, %c0_i32, %c0_i32_0 : i32, i32, i32
  }
}

</mosaic_0001>

<bundles_post_ra>
// kernel: _lambda_.2
= control target key start
LH: loop header
LB: loop body
LE: loop exit
PB: predicated region body
PF: predicated region fallthrough
CT: control target
= control target key end

     0   :  { %vm35_vm0 = vcmask 949248   ;;  %vm134_vm1 = vcmask 326656   ;;  %s242_s1 = inlined_call_operand.vmem [shape: f32[40,500], index: 1, kind: input, shape index: {}]   ;;  %s243_s0 = inlined_call_operand.vmem [shape: f32[8,500], index: 0, kind: input, shape index: {}]   ;;  %s244_s2 = inlined_call_operand.vmem [shape: f32[8,40], index: 2, kind: output, shape index: {}]  }
   0x1   :  { %v33_v0 = vld [vmem:[%s242_s1 + $0x90] sm:$0xff]  ;;  %v34_v1 = vld [vmem:[%s242_s1 + $0x98] sm:$0xff]  ;;  %v31_v2 = vld [vmem:[%s242_s1 + $0x80] sm:$0xff] }
   0x2   :  { %105 = vmatpush.xpose.msra.mxu2 %v33_v0  ;;  %140 = vmatpush.xpose.msk.msra.mxu3 %vm35_vm0, %v34_v1  ;;  %v32_v3 = vld [vmem:[%s242_s1 + $0x88] sm:$0xff]  ;;  %v29_v4 = vld [vmem:[%s242_s1 + $0x70] sm:$0xff]  ;;  %v30_v5 = vld [vmem:[%s242_s1 + $0x78] sm:$0xff] }
   0x3   :  { %65 = vmatpush.xpose.msra.mxu0 %v31_v2  ;;  %85 = vmatpush.xpose.msra.mxu1 %v32_v3  ;;  %v27_v6 = vld [vmem:[%s242_s1 + $0x60] sm:$0xff]  ;;  %v28_v7 = vld [vmem:[%s242_s1 + $0x68] sm:$0xff]  ;;  %v25_v8 = vld [vmem:[%s242_s1 + $0x50] sm:$0xff] }
   0x4   :  { %v26_v9 = vld [vmem:[%s242_s1 + $0x58] sm:$0xff]  ;;  %v23_v10 = vld [vmem:[%s242_s1 + $0x40] sm:$0xff]  ;;  %v24_v11 = vld [vmem:[%s242_s1 + $0x48] sm:$0xff] }
   0x5   :  { %v21_v12 = vld [vmem:[%s242_s1 + $0x30] sm:$0xff]  ;;  %v22_v13 = vld [vmem:[%s242_s1 + $0x38] sm:$0xff]  ;;  %v19_v14 = vld [vmem:[%s242_s1 + $0x20] sm:$0xff] }
   0x6   :  { %106 = vmatpush.xpose.msra.mxu2 %v29_v4  ;;  %141 = vmatpush.xpose.msk.msra.mxu3 %vm35_vm0, %v30_v5  ;;  %v20_v15 = vld [vmem:[%s242_s1 + $0x28] sm:$0xff]  ;;  %v17_v16 = vld [vmem:[%s242_s1 + $0x10] sm:$0xff]  ;;  %v18_v17 = vld [vmem:[%s242_s1 + $0x18] sm:$0xff] }
   0x7   :  { %66 = vmatpush.xpose.msra.mxu0 %v27_v6  ;;  %86 = vmatpush.xpose.msra.mxu1 %v28_v7  ;;  %v15_v18 = vld [vmem:[%s242_s1] sm:$0xff]  ;;  %v16_v19 = vld [vmem:[%s242_s1 + $0x8] sm:$0xff]  ;;  %v13_v20 = vld [vmem:[%s243_s0 + $0x10] sm:$0xff] }
   0x8   :  { %v14_v21 = vld [vmem:[%s243_s0 + $0x18] sm:$0xff]  ;;  %v11_v22 = vld [vmem:[%s243_s0] sm:$0xff]  ;;  %v12_v23 = vld [vmem:[%s243_s0 + $0x8] sm:$0xff] }
   0xa   :  { %107 = vmatpush.xpose.msra.mxu2 %v25_v8  ;;  %142 = vmatpush.xpose.msk.msra.mxu3 %vm35_vm0, %v26_v9 }
   0xb   :  { %67 = vmatpush.xpose.msra.mxu0 %v23_v10  ;;  %87 = vmatpush.xpose.msra.mxu1 %v24_v11 }
   0xe   :  { %108 = vmatpush.xpose.msra.mxu2 %v21_v12  ;;  %143 = vmatpush.xpose.msk.msra.mxu3 %vm35_vm0, %v22_v13 }
   0xf   :  { %68 = vmatpush.xpose.msra.mxu0 %v19_v14  ;;  %88 = vmatpush.xpose.msra.mxu1 %v20_v15 }
  0x12   :  { %109 = vmatpush.xpose.msra.mxu2 %v17_v16  ;;  %144 = vmatpush.xpose.msk.msra.mxu3 %vm35_vm0, %v18_v17 }
  0x13   :  { %69 = vmatpush.xpose.msra.mxu0 %v15_v18  ;;  %89 = vmatpush.xpose.msra.mxu1 %v16_v19 }
  0x15   :  { %110 = vmatmul.f32.vlgmr.msra.gmra.mxu2 %v13_v20  ;;  %145 = vmatmul.msk.f32.vlgmr.msra.gmra.mxu3 %vm35_vm0, %v14_v21 }
  0x16   :  { %70 = vmatmul.f32.vlgmr.msra.gmra.mxu0 %v11_v22  ;;  %90 = vmatmul.f32.vlgmr.msra.gmra.mxu1 %v12_v23 }
  0x93   :  { %v71_v24 = vpop.f32.mrf.mxu0  ;;  %v91_v25 = vpop.f32.mrf.mxu1 }
  0x94   :  { %v92_v26 = vadd.f32 %v91_v25, %v71_v24 }
  0x98   :  { %v111_v27 = vpop.f32.mrf.mxu2  ;;  %v131_v28 = vpop.f32.mrf.mxu3 }
  0x99   :  { %v112_v29 = vadd.f32 %v111_v27, %v92_v26 }
  0x9b   :  { %v132_v30 = vadd.f32 %v131_v28, %v112_v29 }
  0x9d   :  { %135 = vst.msk [vmem:[%s244_s2] sm:$0xff] %vm134_vm1, %v132_v30 }

// kernel: _lambda_.3
= control target key start
LH: loop header
LB: loop body
LE: loop exit
PB: predicated region body
PF: predicated region fallthrough
CT: control target
= control target key end

     0   :  { %s2262_s0 = inlined_call_operand.vmem [shape: f32[2,3], index: 0, kind: input, shape index: {}]   ;;  %s2263_s1 = inlined_call_operand.vmem [shape: f32[2,1,128], index: 1, kind: input, shape index: {}]   ;;  %s2264_s2 = inlined_call_operand.vmem [shape: f32[2,1,128], index: 2, kind: input, shape index: {}]   ;;  %s2265_s3 = inlined_call_operand.vmem [shape: f32[2,1,128], index: 3, kind: input, shape index: {}]   ;;  %s2266_s4 = inlined_call_operand.vmem [shape: f32[2,1,128], index: 4, kind: input, shape index: {}]   ;;  %s2267_s5 = inlined_call_operand.vmem [shape: f32[2,1,128], index: 5, kind: input, shape index: {}]   ;;  %s2268_s6 = inlined_call_operand.vmem [shape: bf16[2,33,128], index: 6, kind: input, shape index: {}]   ;;  %s2269_s7 = inlined_call_operand.vmem [shape: f32[2,32,1], index: 7, kind: input, shape index: {}]   ;;  %s2270_s8 = inlined_call_operand.vmem [shape: f32[32,2], index: 8, kind: input, shape index: {}]   ;;  %s2271_s9 = inlined_call_operand.vmem [shape: f32[32,1], index: 9, kind: input, shape index: {}]   ;;  %s2272_s10 = inlined_call_operand.vmem [shape: bf16[64,32], index: 10, kind: input, shape index: {}]   ;;  %s2273_s11 = inlined_call_operand.vmem [shape: f32[64,1], index: 11, kind: input, shape index: {}]   ;;  %s2274_s12 = inlined_call_operand.vmem [shape: bf16[64,33], index: 12, kind: input, shape index: {}]   ;;  %s2275_s13 = inlined_call_operand.vmem [shape: f32[64,1], index: 13, kind: input, shape index: {}]   ;;  %s2276_s14 = inlined_call_operand.vmem [shape: bf16[64,32], index: 14, kind: input, shape index: {}]   ;;  %s2277_s15 = inlined_call_operand.vmem [shape: f32[64,1], index: 15, kind: input, shape index: {}]   ;;  %s2278_s16 = inlined_call_operand.vmem [shape: bf16[32,32], index: 16, kind: input, shape index: {}]   ;;  %s2279_s17 = inlined_call_operand.vmem [shape: f32[32,1], index: 17, kind: input, shape index: {}]   ;;  %s2280_s18 = inlined_call_operand.vmem [shape: f32[32,1], index: 18, kind: input, shape index: {}]   ;;  %s2281_s19 = inlined_call_operand.<no memory space> [shape: f32[1,1], index: 19, kind: input, shape index: {}]   ;;  %s2282_s20 = inlined_call_operand.vmem [shape: f32[2,2,128], index: 20, kind: output, shape index: {}]  }
   0x1   :  { %2283 = sst [smem:[#allocation6_spill]] %s2262_s0  ;;  %v25_v0 = vstv %s2281_s19 }
   0x2   :  { %2284 = sst [smem:[#allocation7_spill]] %s2263_s1  ;;  %26 = vst [vmem:[#allocation2] sm:$0x1] %v25_v0 }
   0x3   :  { %2285 = sst [smem:[#allocation8_spill]] %s2264_s2 }
   0x4   :  { %2286 = sst [smem:[#allocation9_spill]] %s2265_s3 }
   0x5   :  { %2287 = sst [smem:[#allocation10_spill]] %s2266_s4 }
   0x6   :  { %2288 = sst [smem:[#allocation11_spill]] %s2269_s7 }
   0x7   :  { %2289 = sst [smem:[#allocation12_spill]] %s2270_s8 }
   0x8   :  { %2290 = sst [smem:[#allocation13_spill]] %s2271_s9 }
   0x9   :  { %27 = vsyncpa [#allocation4], 0  ;;  %s1937_s23 = smov 0  }
   0xa LB: > { %s1943_s24 = sadd.s32 4294967295, %s1823_s23   ;;  %p1629_p0 = scmp.ge.s32.totalorder %s1823_s23, 1  ;;  %s1823_s23 = sphi %s1937_s23, %s33_s23  }
   0xb   : > { %p519_p1 = scmp.lt.s32.totalorder %s1823_s23, 3  ;;  %s2291_s19 = sld [smem:[#allocation6_spill]] }
   0xc   : > { %p1755_p3 = scmp.eq.s32.totalorder %s1943_s24, 0  ;;  %s1825_s26 = smov [#allocation3]  }
   0xd   : > { %p520_p2 = pnand %p1629_p0, %p519_p1 }
   0xf   : > { %p1751_p4 = pneg %p520_p2  ;;  %626 = sbr.rel (%p520_p2) target bundleno = 968 (0x3c8), region = 100 }
  0x11   : > { %s531_s3 = sshll.u32 %s2291_s19, 4  ;;  %p1752_p5 = pnand %p1755_p3, %p1751_p4  ;;  %s532_s3 = int_to_ptr.vmem [resolvable:$true] %s531_s3 }
  0x13   : > { %1754 = dma.vmem_to_smem (!%p1752_p5), %s532_s3, 32, %s1825_s26, [#allocation4]  }
  0x14   : > { %1818 = dma.done.wait (%p1755_p3), [#allocation4], 32  }
  0x15   : > { %1820 = vsyncadd (%p1755_p3), [#allocation4], 4294967264 }
  0x16   : > { %633 = sfence }
  0x17   : > { %s2292_s8 = sld [smem:[#allocation12_spill]]  ;;  %v1826_v3 = vmov 1   ;;  %v1827_v4 = vmov 0   ;;  %p705_p6 = scmp.lt.s32.totalorder %s1943_s24, 1  ;;  %v890_v13 = vld [vmem:[%s2273_s11 + $0x10] sm:$0xff]  ;;  %v889_v16 = vld [vmem:[%s2273_s11 + $0x8] sm:$0xff] }
  0x18   : > { %1771 = vset.pattern.permute.xlu0 %v1826_v3  ;;  %1769 = vset.pattern.permute.xlu1 %v1826_v3  ;;  %s2293_s9 = sld [smem:[#allocation13_spill]]  ;;  %v888_v17 = vld [vmem:[%s2273_s11] sm:$0xff]  ;;  %v891_v18 = vld [vmem:[%s2273_s11 + $0x18] sm:$0xff]  ;;  %v1104_v21 = vld [vmem:[%s2275_s13 + $0x10] sm:$0xff]  ;;  %s1638_s22 = sshll.u32 %s1943_s24, 7  ;;  %vm1059_vm0 = vcmask 1040384  }
  0x19   : > { %1770 = vset.pattern.permute.xlu2 %v1827_v4  ;;  %s1970_s25 = scalar_select %p705_p6, %s1943_s24, 1  ;;  %v1102_v19 = vld [vmem:[%s2275_s13] sm:$0xff]  ;;  %v1105_v20 = vld [vmem:[%s2275_s13 + $0x18] sm:$0xff]  ;;  %v894_v23 = vld [vmem:[%s2273_s11 + $0x30] sm:$0xff]  ;;  %v1061_v53 = vsel %vm1059_vm0, 65535, %v1827_v4  ;;  %vm1046_vm1 = vcmask 269312  }
  0x1a   : > { %s2294_s7 = sld [smem:[#allocation11_spill]]  ;;  %v895_v22 = vld [vmem:[%s2273_s11 + $0x38] sm:$0xff]  ;;  %v1103_v24 = vld [vmem:[%s2275_s13 + $0x8] sm:$0xff]  ;;  %v1108_v25 = vld [vmem:[%s2275_s13 + $0x30] sm:$0xff]  ;;  %s737_s19 = sadd.s32 1, %s1638_s22  ;;  %vm956_vm2 = vcmask 261120  }
  0x1b   : > { %s1725_s29 = sshll.u32 %s1970_s25, 5  ;;  %v893_v26 = vld [vmem:[%s2273_s11 + $0x28] sm:$0xff]  ;;  %v892_v27 = vld [vmem:[%s2273_s11 + $0x20] sm:$0xff]  ;;  %v1109_v30 = vld [vmem:[%s2275_s13 + $0x38] sm:$0xff]  ;;  %s736_s4 = sld [smem:[#allocation3 + %s1638_s22]] }
  0x1c   : > { %v1107_v28 = vld [vmem:[%s2275_s13 + $0x28] sm:$0xff]  ;;  %v1106_v29 = vld [vmem:[%s2275_s13 + $0x20] sm:$0xff]  ;;  %v1259_v32 = vld [vmem:[%s2277_s15 + $0x38] sm:$0xff]  ;;  %s2295_s27 = sld [smem:[#allocation10_spill]]  ;;  %s719_s1 = scalar_lea.vmem %s2267_s5, %s1970_s25 }
  0x1d   : > { %v762_v1 = vld [vmem:[%s2292_s8 + $0x10] sm:$0xff]  ;;  %v760_v2 = vld [vmem:[%s2292_s8] sm:$0xff]  ;;  %v763_v5 = vld [vmem:[%s2292_s8 + $0x18] sm:$0xff]  ;;  %s739_s2 = sadd.s32 2, %s1638_s22  ;;  %s2297_s0 = sld [smem:[#allocation8_spill]] }
  0x1e   : > { %800 = vperm.xlu1 %1769, %v762_v1   ;;  %792 = vperm.xlu0 %1771, %v760_v2   ;;  %v761_v6 = vld [vmem:[%s2292_s8 + $0x8] sm:$0xff]  ;;  %v820_v7 = vld [vmem:[%s2293_s9 + $0x10] sm:$0xff]  ;;  %v818_v8 = vld [vmem:[%s2293_s9] sm:$0xff]  ;;  %s740_s3 = sld [smem:[#allocation3 + %s739_s2]] }
  0x1f   : > { %766 = vperm.xlu2 %1770, %v760_v2   ;;  %v821_v9 = vld [vmem:[%s2293_s9 + $0x18] sm:$0xff]  ;;  %v819_v10 = vld [vmem:[%s2293_s9 + $0x8] sm:$0xff]  ;;  %v1256_v31 = vld [vmem:[%s2277_s15 + $0x20] sm:$0xff]  ;;  %s2081_s9 = sld [smem:[#allocation3 + %s737_s19]] }
  0x20   : > { %s729_s21 = scalar_lea.vmem %s2294_s7, %s1725_s29  ;;  %v1258_v33 = vld [vmem:[%s2277_s15 + $0x30] sm:$0xff]  ;;  %v1360_v34 = vld [vmem:[%s2279_s17 + $0x8] sm:$0xff]  ;;  %v1359_v35 = vld [vmem:[%s2279_s17] sm:$0xff]  ;;  %s1742_s29 = smul.u32 20, %s1970_s25 }
  0x21   : > { %v853_v11 = vld [vmem:[%s729_s21 + $0x18] sm:$0xff]  ;;  %v852_v12 = vld [vmem:[%s729_s21 + $0x10] sm:$0xff]  ;;  %v851_v14 = vld [vmem:[%s729_s21 + $0x8] sm:$0xff]  ;;  %s747_s7 = ssub.f32 1.0, %s736_s4  ;;  %v745_v44 = vstv %s736_s4 }
  0x22   : > { %v850_v15 = vld [vmem:[%s729_s21] sm:$0xff]  ;;  %v1257_v36 = vld [vmem:[%s2277_s15 + $0x28] sm:$0xff]  ;;  %v1362_v38 = vld [vmem:[%s2279_s17 + $0x18] sm:$0xff]  ;;  %s716_s28 = scalar_lea.vmem %s2295_s27, %s1970_s25  ;;  %s2075_s8 = scalar_lea.vmem %s2268_s6, %s1742_s29 }
  0x23   : > { %v1422_v37 = vld [vmem:[%s2280_s18] sm:$0xff]  ;;  %v1361_v39 = vld [vmem:[%s2279_s17 + $0x10] sm:$0xff]  ;;  %v1425_v40 = vld [vmem:[%s2280_s18 + $0x18] sm:$0xff]  ;;  %v749_v46 = vstv %s747_s7  ;;  %s2296_s4 = sld [smem:[#allocation7_spill]]  ;;  %s710_s21 = scalar_lea.vmem %s2297_s0, %s1970_s25 }
  0x24   : > { %v1010_v42 = vld [vmem:[%s2075_s8 + $0x10] sm:$0x1]  ;;  %v744_v43 = vld [vmem:[%s716_s28] sm:$0x1]  ;;  %v1423_v49 = vld [vmem:[%s2280_s18 + $0x8] sm:$0xff]  ;;  %v754_v62 = vstv %s740_s3  ;;  %s2304_s28 = sld [smem:[#allocation9_spill]] }
  0x25   : > { %v748_v45 = vld [vmem:[%s719_s1] sm:$0x1]  ;;  %v1040_v47 = vunpack.c.l.b16 %v1010_v42  ;;  %v1424_v48 = vld [vmem:[%s2280_s18 + $0x10] sm:$0xff]  ;;  %v746_v51 = vmul.f32 %v745_v44, %v744_v43  ;;  %v1735_v59 = vld [vmem:[%s2075_s8 + $0x8] sm:$0xff]  ;;  %v752_v61 = vstv %s2081_s9 }
  0x26   : > { %804 = vperm.xlu1 %1769, %v763_v5   ;;  %1772 = vset.pattern.permute.xlu0 %v1827_v4  ;;  %v750_v52 = vmul.f32 %v749_v46, %v748_v45  ;;  %v1459_v63 = vld [vmem:[#allocation2] sm:$0x1] }
  0x27   : > { %771 = vperm.xlu2 %1770, %v761_v6   ;;  %776 = vperm.xlu0 %1772, %v762_v1   ;;  %v1043_v50 = vpack.c.b16 %v1040_v47, %v1040_v47  ;;  %v2105_v2 = vld [vmem:[%s710_s21] sm:$0x1]  ;;  %s1637_s21 = sshll.u32 %s1970_s25, 1 }
  0x28   : > { %v2096_v58 = vadd.f32 %v750_v52, %v746_v51  ;;  %v1734_v3 = vld [vmem:[%s2075_s8] sm:$0xff]  ;;  %v1733_v52 = vld [vmem:[%s2274_s12 + $0x18] sm:$0xff]  ;;  %s733_s2 = scalar_lea.vmem %s2282_s20, %s1637_s21 }
  0x29   : > { %v1063_v54 = vand.u32 %v1061_v53, %v1043_v50  ;;  %s707_s19 = scalar_lea.vmem %s2296_s4, %s1970_s25  ;;  %v1726_v51 = vld [vmem:[%s2272_s10] sm:$0xff]  ;;  %v1727_v53 = vld [vmem:[%s2272_s10 + $0x8] sm:$0xff] }
  0x2a   : > { %v741_v60 = vld [vmem:[%s707_s19] sm:$0x1]  ;;  %v755_v1 = vmul.f32 %v754_v62, %v2096_v58  ;;  %s713_s24 = scalar_lea.vmem %s2304_s28, %s1970_s25 }
  0x2b   : > { %1070 = vmatpush.bf16.msra.mxu1 %v1063_v54  ;;  %v753_v0 = vmul.f32 %v752_v61, %v741_v60  ;;  %v1728_v54 = vld [vmem:[%s2272_s10 + $0x10] sm:$0xff] }
  0x2e   : > { %796 = vperm.xlu1 %1769, %v761_v6   ;;  %v758_v6 = vsub.f32 1.0, %v2105_v2 }
  0x2f   : > { %834 = vperm.xlu2 %1770, %v820_v7   ;;  %781 = vperm.xlu0 %1772, %v763_v5   ;;  %v756_v5 = vadd.f32 %v755_v1, %v753_v0 }
  0x30   : > { %1071 = vmatpush.bf16.msra.mxu1 %v1735_v59 }
  0x34   : > { %1072 = vmatpush.bf16.msra.mxu1 %v1734_v3 }
  0x36   : > { %1773 = vset.pattern.permute.xlu1 %v1827_v4 }
  0x37   : > { %824 = vperm.xlu2 %1770, %v818_v8   ;;  %839 = vperm.xlu1 %1773, %v821_v9   ;;  %v1730_v8 = vld [vmem:[%s2274_s12] sm:$0xff] }
  0x38   : > { %829 = vperm.xlu0 %1772, %v819_v10   ;;  %1683 = vmatmul.msk.bf16.vlgmr.msra.gmra.mxu1 %vm1046_vm1, %v1730_v8  ;;  %v757_v10 = vmul.f32 %v2105_v2, %v741_v60 }
  0x3f   : > { %871 = vperm.xlu2 %1770, %v853_v11   ;;  %866 = vperm.xlu1 %1773, %v852_v12   ;;  %v759_v11 = vmul.f32 %v758_v6, %v756_v5 }
  0x40   : > { %908 = vperm.xlu0 %1772, %v890_v13   ;;  %v785_v13 = vperm.slane %v757_v10, 0 }
  0x47   : > { %861 = vperm.xlu2 %1770, %v851_v14   ;;  %856 = vperm.xlu1 %1773, %v850_v15   ;;  %v808_v14 = vperm.slane %v759_v11, 0 }
  0x48   : > { %903 = vperm.xlu0 %1772, %v889_v16  }
  0x4f   : > { %898 = vperm.xlu2 %1770, %v888_v17   ;;  %913 = vperm.xlu1 %1773, %v891_v18  }
  0x50   : > { %1112 = vperm.xlu0 %1772, %v1102_v19  }
  0x57   : > { %1127 = vperm.xlu2 %1770, %v1105_v20   ;;  %1122 = vperm.xlu1 %1773, %v1104_v21  }
  0x58   : > { %933 = vperm.xlu0 %1772, %v895_v22  }
  0x5f   : > { %928 = vperm.xlu2 %1770, %v894_v23   ;;  %1117 = vperm.xlu1 %1773, %v1103_v24  }
  0x60   : > { %1142 = vperm.xlu0 %1772, %v1108_v25   ;;  %v1731_v25 = vld [vmem:[%s2274_s12 + $0x8] sm:$0xff] }
  0x61   : > { %1684 = vmatmul.msk.bf16.gmra.mxu1 %vm1046_vm1, %v1731_v25 }
  0x67   : > { %923 = vperm.xlu2 %1770, %v893_v26   ;;  %918 = vperm.xlu1 %1773, %v892_v27  }
  0x68   : > { %1137 = vperm.xlu0 %1772, %v1107_v28  }
  0x6f   : > { %1132 = vperm.xlu2 %1770, %v1106_v29   ;;  %1147 = vperm.xlu1 %1773, %v1109_v30  }
  0x70   : > { %1278 = vperm.xlu0 %1772, %v1256_v31  }
  0x77   : > { %1293 = vperm.xlu2 %1770, %v1259_v32   ;;  %1288 = vperm.xlu1 %1773, %v1258_v33  }
  0x78   : > { %1370 = vperm.xlu0 %1772, %v1360_v34  }
  0x79   : > { %v2070_v41 = vpop.permute.xlu2 %766 }
  0x7a   : > { %v787_v26 = vmul.f32 %v785_v13, %v2070_v41 }
  0x7f   : > { %1365 = vperm.xlu2 %1770, %v1359_v35   ;;  %1283 = vperm.xlu1 %1773, %v1257_v36  }
  0x80   : > { %1428 = vperm.xlu0 %1772, %v1422_v37  }
  0x81   : > { %v772_v56 = vpop.permute.xlu2 %771 }
  0x82   : > { %v788_v30 = vmul.f32 %v785_v13, %v772_v56 }
  0x87   : > { %1380 = vperm.xlu2 %1770, %v1362_v38   ;;  %1375 = vperm.xlu1 %1773, %v1361_v39  }
  0x88   : > { %1443 = vperm.xlu0 %1772, %v1425_v40  }
  0x89   : > { %v835_v9 = vpop.permute.xlu2 %834 }
  0x8f   : > { %1438 = vperm.xlu2 %1770, %v1424_v48   ;;  %1433 = vperm.xlu1 %1773, %v1423_v49   ;;  %v1732_v49 = vld [vmem:[%s2274_s12 + $0x10] sm:$0xff] }
  0x90   : > { %v801_v55 = vpop.permute.xlu1 %800  ;;  %v793_v57 = vpop.permute.xlu0 %792  ;;  %1685 = vmatmul.msk.bf16.gmra.mxu1 %vm1046_vm1, %v1732_v49 }
  0x91   : > { %v825_v18 = vpop.permute.xlu2 %824  ;;  %v812_v19 = vmul.f32 %v808_v14, %v801_v55  ;;  %v810_v27 = vmul.f32 %v808_v14, %v793_v57  ;;  %v1729_v55 = vld [vmem:[%s2272_s10 + $0x18] sm:$0xff] }
  0x93   : > { %v814_v34 = vadd.f32 %v810_v27, %v787_v26 }
  0x95   : > { %v842_v42 = vadd.f32 %v825_v18, %v814_v34 }
  0x97   : > { %1462 = vperm.xlu1 %1773, %v1459_v63   ;;  %v846_v41 = vmax.f32 %v842_v42, 0.0 }
  0x98   : > { %v805_v4 = vpop.permute.xlu1 %804 }
  0x99   : > { %v777_v7 = vpop.permute.xlu0 %776  ;;  %v813_v20 = vmul.f32 %v808_v14, %v805_v4  ;;  %v872_v32 = vpop.permute.xlu2 %871 }
  0x9a   : > { %v789_v16 = vmul.f32 %v785_v13, %v777_v7 }
  0x9c   : > { %v816_v21 = vadd.f32 %v812_v19, %v789_v16 }
  0x9e   : > { %v844_v29 = vadd.f32 %v835_v9, %v816_v21 }
  0xa0   : > { %v797_v12 = vpop.permute.xlu1 %796  ;;  %v848_v36 = vmax.f32 %v844_v29, 0.0  ;;  %1686 = vmatmul.msk.bf16.gmra.mxu1 %vm1046_vm1, %v1733_v52 }
  0xa1   : > { %v782_v15 = vpop.permute.xlu0 %781  ;;  %v811_v28 = vmul.f32 %v808_v14, %v797_v12  ;;  %v862_v45 = vpop.permute.xlu2 %861 }
  0xa2   : > { %v790_v17 = vmul.f32 %v785_v13, %v782_v15 }
  0xa3   : > { %v815_v35 = vadd.f32 %v811_v28, %v788_v30 }
  0xa4   : > { %v817_v22 = vadd.f32 %v813_v20, %v790_v17 }
  0xa9   : > { %v840_v23 = vpop.permute.xlu1 %839  ;;  %v899_v1 = vpop.permute.xlu2 %898 }
  0xaa   : > { %v845_v24 = vadd.f32 %v840_v23, %v817_v22  ;;  %v830_v33 = vpop.permute.xlu0 %829 }
  0xab   : > { %v843_v38 = vadd.f32 %v830_v33, %v815_v35 }
  0xac   : > { %v849_v31 = vmax.f32 %v845_v24, 0.0 }
  0xad   : > { %v847_v44 = vmax.f32 %v843_v38, 0.0 }
  0xae   : > { %v877_v40 = vadd.f32 %v872_v32, %v849_v31 }
  0xaf   : > { %v875_v47 = vadd.f32 %v862_v45, %v847_v44 }
  0xb1   : > { %v867_v37 = vpop.permute.xlu1 %866  ;;  %v1128_v23 = vpop.permute.xlu2 %1127 }
  0xb2   : > { %v876_v39 = vadd.f32 %v867_v37, %v848_v36  ;;  %v909_v57 = vpop.permute.xlu0 %908 }
  0xb4   : > { %v879_v43 = vpack.c.bf16 %v877_v40, %v876_v39 }
  0xb5   : > { %v1074_v56 = vpop.f32.mrf.mxu1 }
  0xb6   : > { %975 = vmatpush.bf16.msra.mxu0 %v879_v43 }
  0xb9   : > { %v857_v46 = vpop.permute.xlu1 %856  ;;  %v929_v36 = vpop.permute.xlu2 %928 }
  0xba   : > { %v874_v48 = vadd.f32 %v857_v46, %v846_v41  ;;  %v904_v62 = vpop.permute.xlu0 %903 }
  0xbc   : > { %v878_v50 = vpack.c.bf16 %v875_v47, %v874_v48 }
  0xbd   : > { %v1076_v59 = vpop.f32.mrf.mxu1 }
  0xbe   : > { %976 = vmatpush.bf16.msra.mxu0 %v878_v50 }
  0xc1   : > { %1655 = vmatmul.msk.bf16.vlgmr.msra.gmra.mxu0 %vm956_vm2, %v1726_v51  ;;  %v914_v61 = vpop.permute.xlu1 %913  ;;  %v924_v47 = vpop.permute.xlu2 %923 }
  0xc2   : > { %v1113_v9 = vpop.permute.xlu0 %1112 }
  0xc9   : > { %v1123_v3 = vpop.permute.xlu1 %1122 }
  0xca   : > { %v934_v32 = vpop.permute.xlu0 %933 }
  0xd1   : > { %1656 = vmatmul.msk.bf16.gmra.mxu0 %vm956_vm2, %v1727_v53  ;;  %v1118_v14 = vpop.permute.xlu1 %1117 }
  0xd2   : > { %v1143_v43 = vpop.permute.xlu0 %1142 }
  0xd9   : > { %v919_v49 = vpop.permute.xlu1 %918 }
  0xde   : > { %v1079_v0 = vpop.f32.mrf.mxu1 }
  0xe1   : > { %1657 = vmatmul.msk.bf16.gmra.mxu0 %vm956_vm2, %v1728_v54 }
  0xe6   : > { %v1081_v11 = vpop.f32.mrf.mxu1 }
  0xf1   : > { %1658 = vmatmul.msk.bf16.gmra.mxu0 %vm956_vm2, %v1729_v55 }
 0x10d   : > { %v1084_v24 = vpop.f32.mrf.mxu1 }
 0x115   : > { %v1086_v34 = vpop.f32.mrf.mxu1 }
 0x11d   : > { %v1089_v41 = vpop.f32.mrf.mxu1 }
 0x13e   : > { %v978_v60 = vpop.f32.mrf.mxu0 }
 0x13f   : > { %v979_v4 = vadd.f32 %v978_v60, %v899_v1 }
 0x141   : > { %v1094_v6 = vadd.f32 %v1074_v56, %v979_v4 }
 0x143   : > { %v1150_v12 = vadd.f32 %v1113_v9, %v1094_v6  ;;  %v1091_v6 = vpop.f32.mrf.mxu1 }
 0x145   : > { %v1687_v17 = vmul.f32 -1.442695, %v1150_v12 }
 0x146   : > { %v980_v63 = vpop.f32.mrf.mxu0 }
 0x147   : > { %v981_v5 = vadd.f32 %v980_v63, %v904_v62  ;;  %1774 = vpow2.f32 %v1687_v17 }
 0x149   : > { %v1095_v10 = vadd.f32 %v1076_v59, %v981_v5 }
 0x14b   : > { %v1151_v16 = vadd.f32 %v1118_v14, %v1095_v10  ;;  %v1133_v10 = vpop.permute.xlu2 %1132 }
 0x14d   : > { %v1688_v21 = vmul.f32 -1.442695, %v1151_v16  ;;  %v1775_v28 = vpop.eup %1774 }
 0x14e   : > { %v983_v7 = vpop.f32.mrf.mxu0  ;;  %v2143_v31 = vadd.f32 1.0, %v1775_v28 }
 0x14f   : > { %v984_v8 = vadd.f32 %v983_v7, %v909_v57 }
 0x150   : > { %vm1179_vm12 = vweird.f32 %v2143_v31 }
 0x151   : > { %v1096_v13 = vadd.f32 %v1079_v0, %v984_v8  ;;  %v1138_v0 = vpop.permute.xlu0 %1137 }
 0x153   : > { %v1152_v15 = vadd.f32 %v1123_v3, %v1096_v13 }
 0x155   : > { %v1689_v18 = vmul.f32 -1.442695, %v1152_v15 }
 0x156   : > { %v985_v19 = vpop.f32.mrf.mxu0 }
 0x157   : > { %v986_v20 = vadd.f32 %v985_v19, %v914_v61  ;;  %1776 = vpow2.f32 %v1689_v18 }
 0x158   : > { %1778 = vpow2.f32 %v1688_v21 }
 0x159   : > { %v1097_v22 = vadd.f32 %v1081_v11, %v986_v20  ;;  %v1148_v11 = vpop.permute.xlu1 %1147 }
 0x15b   : > { %v1153_v25 = vadd.f32 %v1128_v23, %v1097_v22 }
 0x15d   : > { %v1690_v26 = vmul.f32 -1.442695, %v1153_v25  ;;  %v1777_v29 = vpop.eup %1776 }
 0x15e   : > { %v988_v27 = vpop.f32.mrf.mxu0  ;;  %v1779_v30 = vpop.eup %1778  ;;  %v2145_v33 = vadd.f32 1.0, %v1777_v29 }
 0x15f   : > { %1780 = vpow2.f32 %v1690_v26  ;;  %v2147_v37 = vadd.f32 1.0, %v1779_v30  ;;  %v989_v55 = vadd.f32 %v988_v27, %v919_v49 }
 0x160   : > { %1782 = vrcp.f32 %v2143_v31  ;;  %vm1209_vm3 = vweird.f32 %v2145_v33  ;;  %v1213_v18 = vand.u32 2147483647, %v2145_v33  ;;  %v1215_v19 = vand.u32 2147483648, %v2145_v33 }
 0x161   : > { %1784 = vrcp.f32 %v2145_v33  ;;  %v1098_v1 = vadd.f32 %v1084_v24, %v989_v55  ;;  %vm1194_vm11 = vweird.f32 %v2147_v37  ;;  %v1200_v25 = vand.u32 2147483648, %v2147_v37  ;;  %v1738_v55 = vld [vmem:[%s2276_s14 + $0x10] sm:$0xff] }
 0x162   : > { %v1198_v29 = vand.u32 2147483647, %v2147_v37  ;;  %vm1214_vm14 = vcmp.eq.f32.partialorder %v1213_v18, 8.507059e+37 }
 0x163   : > { %v1154_v14 = vadd.f32 %v1133_v10, %v1098_v1  ;;  %v1279_v10 = vpop.permute.xlu0 %1278 }
 0x165   : > { %v1781_v35 = vpop.eup %1780 }
 0x166   : > { %v2150_v38 = vadd.f32 1.0, %v1781_v35  ;;  %v990_v39 = vpop.f32.mrf.mxu0  ;;  %v2155_v40 = vpop.eup %1782 }
 0x167   : > { %v2157_v42 = vpop.eup %1784  ;;  %v991_v50 = vadd.f32 %v990_v39, %v924_v47  ;;  %v1175_v53 = vmul.f32 %v2155_v40, %v2143_v31  ;;  %vm1180_vm10 = vweird.f32 %v2155_v40 }
 0x168   : > { %1786 = vrcp.f32 %v2150_v38  ;;  %v1205_v51 = vmul.f32 %v2157_v42, %v2145_v33  ;;  %vm1210_vm4 = vweird.f32 %v2157_v42  ;;  %v1230_v20 = vand.u32 2147483648, %v2150_v38  ;;  %vm1181_vm1 = vmor %vm1179_vm12, %vm1180_vm10 }
 0x169   : > { %1788 = vrcp.f32 %v2147_v37  ;;  %v1099_v57 = vadd.f32 %v1086_v34, %v991_v50  ;;  %v1176_v62 = vsub.f32 1.0, %v1175_v53  ;;  %vm2185_vm6 = vmor %vm1209_vm3, %vm1210_vm4  ;;  %vm1224_vm7 = vweird.f32 %v2150_v38 }
 0x16a   : > { %v1206_v59 = vsub.f32 1.0, %v1205_v51  ;;  %v1228_v22 = vand.u32 2147483647, %v2150_v38  ;;  %v1231_v33 = vor.u32 1.1754944e-38, %v1230_v20  ;;  %v1185_v34 = vand.u32 2147483648, %v2143_v31 }
 0x16b   : > { %v1155_v5 = vadd.f32 %v1138_v0, %v1099_v57  ;;  %v1177_v12 = vmul.f32 %v2155_v40, %v1176_v62  ;;  %vm1199_vm3 = vcmp.eq.f32.partialorder %v1198_v29, 8.507059e+37  ;;  %v1289_v0 = vpop.permute.xlu1 %1288  ;;  %v1371_v18 = vpop.permute.xlu0 %1370 }
 0x16c   : > { %v1207_v7 = vmul.f32 %v2157_v42, %v1206_v59  ;;  %vm1229_vm15 = vcmp.eq.f32.partialorder %v1228_v22, 8.507059e+37  ;;  %v1186_v49 = vor.u32 1.1754944e-38, %v1185_v34 }
 0x16d   : > { %v1178_v28 = vadd.f32 %v2155_v40, %v1177_v12 }
 0x16e   : > { %v2159_v44 = vpop.eup %1786  ;;  %v993_v45 = vpop.f32.mrf.mxu0  ;;  %v1208_v16 = vadd.f32 %v2157_v42, %v1207_v7 }
 0x16f   : > { %v2161_v46 = vpop.eup %1788  ;;  %v994_v48 = vadd.f32 %v993_v45, %v929_v36  ;;  %v1220_v52 = vmul.f32 %v2159_v44, %v2150_v38  ;;  %vm1225_vm5 = vweird.f32 %v2159_v44  ;;  %v1183_v38 = vand.u32 2147483647, %v2143_v31 }
 0x170   : > { %v1190_v54 = vmul.f32 %v2161_v46, %v2147_v37  ;;  %vm1195_vm8 = vweird.f32 %v2161_v46  ;;  %vm2193_vm9 = vmor %vm1224_vm7, %vm1225_vm5  ;;  %v1212_v26 = vsel %vm2185_vm6, %v2157_v42, %v1208_v16  ;;  %v1182_v47 = vsel %vm1181_vm1, %v2155_v40, %v1178_v28  ;;  %v1737_v40 = vld [vmem:[%s2276_s14 + $0x8] sm:$0xff] }
 0x171   : > { %v1100_v56 = vadd.f32 %v1089_v41, %v994_v48  ;;  %v1221_v60 = vsub.f32 1.0, %v1220_v52  ;;  %vm2212_vm13 = vmor %vm1194_vm11, %vm1195_vm8  ;;  %vm1184_vm4 = vcmp.eq.f32.partialorder %v1183_v38, 8.507059e+37 }
 0x172   : > { %v1191_v63 = vsub.f32 1.0, %v1190_v54  ;;  %v1187_v52 = vsel %vm1184_vm4, %v1186_v49, %v1182_v47  ;;  %v1736_v54 = vld [vmem:[%s2276_s14] sm:$0xff] }
 0x173   : > { %v1156_v3 = vadd.f32 %v1143_v43, %v1100_v56  ;;  %v1222_v8 = vmul.f32 %v2159_v44, %v1221_v60  ;;  %v1739_v56 = vld [vmem:[%s2276_s14 + $0x18] sm:$0xff]  ;;  %v1284_v7 = vpop.permute.xlu1 %1283  ;;  %v1429_v28 = vpop.permute.xlu0 %1428 }
 0x174   : > { %v1192_v13 = vmul.f32 %v2161_v46, %v1191_v63 }
 0x175   : > { %1790 = vtanh.f32 %v1156_v3  ;;  %v1223_v17 = vadd.f32 %v2159_v44, %v1222_v8  ;;  %v1294_v3 = vpop.permute.xlu2 %1293 }
 0x176   : > { %v995_v61 = vpop.f32.mrf.mxu0  ;;  %1792 = vtanh.f32 %v1155_v5  ;;  %v1193_v23 = vadd.f32 %v2161_v46, %v1192_v13  ;;  %v1740_v13 = vld [vmem:[%s2278_s16] sm:$0xff] }
 0x177   : > { %v996_v4 = vadd.f32 %v995_v61, %v934_v32  ;;  %v1227_v27 = vsel %vm2193_vm9, %v2159_v44, %v1223_v17  ;;  %v1216_v32 = vor.u32 1.1754944e-38, %v1215_v19  ;;  %v1201_v44 = vor.u32 1.1754944e-38, %v1200_v25  ;;  %v743_v17 = vld [vmem:[%s713_s24] sm:$0x1] }
 0x178   : > { %v1197_v37 = vsel %vm2212_vm13, %v2161_v46, %v1193_v23  ;;  %v1232_v43 = vsel %vm1229_vm15, %v1231_v33, %v1227_v27  ;;  %v1467_v20 = vsub.f32 %v743_v17, %v2105_v2 }
 0x179   : > { %v1101_v9 = vadd.f32 %v1091_v6, %v996_v4  ;;  %v1217_v42 = vsel %vm1214_vm14, %v1216_v32, %v1212_v26  ;;  %v1202_v50 = vsel %vm1199_vm3, %v1201_v44, %v1197_v37 }
 0x17a   : > { %v1481_v21 = vsel %vm1059_vm0, %v1467_v20, 0.0 }
 0x17b   : > { %v1157_v15 = vadd.f32 %v1148_v11, %v1101_v9  ;;  %v1791_v30 = vpop.eup %1790  ;;  %1482 = vadd.xlane.f32.xlu0 %v1481_v21  ;;  %v1376_v22 = vpop.permute.xlu1 %1375 }
 0x17c   : > { %v1793_v36 = vpop.eup %1792  ;;  %v1240_v41 = vmul.f32 %v1791_v30, %v1217_v42 }
 0x17d   : > { %1794 = vtanh.f32 %v1157_v15  ;;  %v1239_v51 = vmul.f32 %v1793_v36, %v1202_v50  ;;  %v1366_v16 = vpop.permute.xlu2 %1365 }
 0x17e   : > { %1796 = vtanh.f32 %v1154_v14  ;;  %v1741_v14 = vld [vmem:[%s2278_s16 + $0x8] sm:$0xff] }
 0x183   : > { %v1795_v39 = vpop.eup %1794  ;;  %v1434_v33 = vpop.permute.xlu1 %1433 }
 0x184   : > { %v1241_v45 = vmul.f32 %v1795_v39, %v1232_v43  ;;  %v1797_v48 = vpop.eup %1796  ;;  %v1444_v43 = vpop.permute.xlu0 %1443 }
 0x185   : > { %v1238_v46 = vmul.f32 %v1797_v48, %v1187_v52  ;;  %v1381_v23 = vpop.permute.xlu2 %1380 }
 0x186   : > { %v1251_v31 = vpack.c.bf16 %v1241_v45, %v1240_v41 }
 0x187   : > { %v1250_v53 = vpack.c.bf16 %v1239_v51, %v1238_v46 }
 0x188   : > { %1334 = vmatpush.bf16.msra.mxu2 %v1251_v31 }
 0x18b   : > { %v1463_v31 = vpop.permute.xlu1 %1462 }
 0x18c   : > { %1335 = vmatpush.bf16.msra.mxu2 %v1250_v53  ;;  %v1465_v52 = vperm.slane %v1463_v31, 0 }
 0x18d   : > { %v1439_v35 = vpop.permute.xlu2 %1438 }
 0x18f   : > { %1707 = vmatmul.msk.bf16.vlgmr.msra.gmra.mxu2 %vm956_vm2, %v1736_v54 }
 0x19f   : > { %1708 = vmatmul.msk.bf16.gmra.mxu2 %vm956_vm2, %v1737_v40 }
 0x1af   : > { %1709 = vmatmul.msk.bf16.gmra.mxu2 %vm956_vm2, %v1738_v55 }
 0x1bf   : > { %1710 = vmatmul.msk.bf16.gmra.mxu2 %vm956_vm2, %v1739_v56 }
 0x212   : > { %v1337_v57 = vpop.f32.mrf.mxu2 }
 0x213   : > { %v1483_v57 = vpop.xlane.xlu0 %1482 }
 0x21a   : > { %v1338_v59 = vpop.f32.mrf.mxu2 }
 0x21b   : > { %v1484_v59 = vrot.slane %v1483_v57, 4 }
 0x222   : > { %v1340_v60 = vpop.f32.mrf.mxu2 }
 0x223   : > { %v1485_v60 = vadd.f32 %v1484_v59, %v1483_v57 }
 0x22a   : > { %v1341_v61 = vpop.f32.mrf.mxu2 }
 0x22b   : > { %v1486_v61 = vrot.slane %v1485_v60, 2 }
 0x232   : > { %v1343_v62 = vpop.f32.mrf.mxu2 }
 0x233   : > { %v1344_v11 = vadd.f32 %v1343_v62, %v1279_v10  ;;  %v1828_v10 = vmov 0.0  }
 0x23a   : > { %v1345_v63 = vpop.f32.mrf.mxu2 }
 0x23b   : > { %v1346_v8 = vadd.f32 %v1345_v63, %v1284_v7 }
 0x23d   : > { %v1357_v12 = vpack.c.bf16 %v1346_v8, %v1344_v11  ;;  %v1491_v8 = vlaneseq }
 0x242   : > { %v1348_v1 = vpop.f32.mrf.mxu2 }
 0x243   : > { %v1349_v5 = vadd.f32 %v1348_v1, %v1289_v0  ;;  %v1487_v1 = vadd.f32 %v1486_v61, %v1485_v60 }
 0x24a   : > { %v1350_v4 = vpop.f32.mrf.mxu2 }
 0x24b   : > { %v1351_v6 = vadd.f32 %v1350_v4, %v1294_v3 }
 0x24d   : > { %v1358_v9 = vpack.c.bf16 %v1351_v6, %v1349_v5  ;;  %v1488_v5 = vrot.slane %v1487_v1, 1 }
 0x24f   : > { %1405 = vmatpush.bf16.msra.mxu3 %v1358_v9  ;;  %v1492_v9 = vshrl.u32 %v1491_v8, 7 }
 0x253   : > { %1406 = vmatpush.bf16.msra.mxu3 %v1357_v12 }
 0x256   : > { %1719 = vmatmul.msk.bf16.vlgmr.msra.gmra.mxu3 %vm956_vm2, %v1740_v13 }
 0x266   : > { %1720 = vmatmul.msk.bf16.gmra.mxu3 %vm956_vm2, %v1741_v14  ;;  %vm1498_vm2 = vcmp.eq.s32.totalorder %v1492_v9, 1 }
 0x267   : > { %v1722_v12 = vsel %vm1498_vm2, 1.0, %v1828_v10 }
 0x2d9   : > { %v1408_v15 = vpop.f32.mrf.mxu3 }
 0x2da   : > { %v1409_v26 = vadd.f32 %v1408_v15, %v1366_v16 }
 0x2dc   : > { %v1418_v30 = vmax.f32 %v1409_v26, 0.0 }
 0x2de   : > { %v1446_v38 = vmul.f32 %v1429_v28, %v1418_v30 }
 0x2e1   : > { %v1410_v19 = vpop.f32.mrf.mxu3 }
 0x2e2   : > { %v1411_v24 = vadd.f32 %v1410_v19, %v1371_v18 }
 0x2e4   : > { %v1419_v29 = vmax.f32 %v1411_v24, 0.0 }
 0x2e6   : > { %v1447_v34 = vmul.f32 %v1434_v33, %v1419_v29 }
 0x2e8   : > { %v1450_v39 = vadd.f32 %v1447_v34, %v1446_v38 }
 0x2e9   : > { %v1413_v25 = vpop.f32.mrf.mxu3 }
 0x2ea   : > { %v1414_v27 = vadd.f32 %v1413_v25, %v1376_v22 }
 0x2ec   : > { %v1420_v32 = vmax.f32 %v1414_v27, 0.0 }
 0x2ee   : > { %v1448_v37 = vmul.f32 %v1439_v35, %v1420_v32 }
 0x2f0   : > { %v1451_v44 = vadd.f32 %v1450_v39, %v1448_v37 }
 0x2f1   : > { %v1415_v36 = vpop.f32.mrf.mxu3 }
 0x2f2   : > { %v1416_v2 = vadd.f32 %v1415_v36, %v1381_v23 }
 0x2f4   : > { %v1421_v42 = vmax.f32 %v1416_v2, 0.0 }
 0x2f6   : > { %v1449_v41 = vmul.f32 %v1444_v43, %v1421_v42 }
 0x2f8   : > { %v1452_v45 = vadd.f32 %v1451_v44, %v1449_v41 }
 0x2fa   : > { %v1453_v47 = vrot.slane %v1452_v45, 4 }
 0x2fc   : > { %v1454_v48 = vadd.f32 %v1453_v47, %v1452_v45 }
 0x2fe   : > { %v1455_v49 = vrot.slane %v1454_v48, 2 }
 0x300   : > { %v1456_v50 = vadd.f32 %v1455_v49, %v1454_v48 }
 0x302   : > { %v1457_v51 = vrot.slane %v1456_v50, 1 }
 0x304   : > { %v1458_v46 = vadd.f32 %v1457_v51, %v1456_v50 }
 0x306   : > { %v1466_v53 = vadd.f32 %v1465_v52, %v1458_v46 }
 0x308   : > { %v1468_v54 = vsub.f32 %v2096_v58, %v1466_v53  ;;  %v1489_v58 = vadd.f32 %v1488_v5, %v1487_v1 }
 0x30a   : > { %v1469_v40 = vmul.f32 %v1468_v54, %v1467_v20 }
 0x30c   : > { %v1470_v55 = vmul.f32 %v1469_v40, %v1469_v40 }
 0x30e   : > { %v1471_v56 = vsel %vm1059_vm0, %v1470_v55, 0.0  ;;  %vm1493_vm0 = vcmp.eq.s32.totalorder %v1492_v9, 0 }
 0x30f   : > { %1472 = vadd.xlane.f32.xlu2 %v1471_v56  ;;  %v1721_v11 = vsel %vm1493_vm0, 1.0, %v1828_v10 }
 0x382   : > { %v1473_v62 = vpop.xlane.xlu2 %1472 }
 0x383   : > { %v1474_v63 = vrot.slane %v1473_v62, 4 }
 0x385   : > { %v1475_v0 = vadd.f32 %v1474_v63, %v1473_v62 }
 0x387   : > { %v1476_v3 = vrot.slane %v1475_v0, 2 }
 0x389   : > { %v1477_v4 = vadd.f32 %v1476_v3, %v1475_v0 }
 0x38b   : > { %v1478_v6 = vrot.slane %v1477_v4, 1 }
 0x38d   : > { %v1479_v7 = vadd.f32 %v1478_v6, %v1477_v4 }
 0x38f   : > { %1743 = vpush %v1479_v7 }
 0x390   : > { %1745 = vpush %v1489_v58 }
 0x3c0   : > { %s1744_s0 = spop %1743 }
 0x3c1   : > { %v1496_v13 = vstv %s1744_s0  ;;  %s1746_s9 = spop %1745 }
 0x3c2   : > { %v1497_v14 = vmul.f32 %v1721_v11, %v1496_v13  ;;  %v1501_v15 = vstv %s1746_s9 }
 0x3c3   : > { %v1502_v16 = vmul.f32 %v1722_v12, %v1501_v15 }
 0x3c5   : > { %v1503_v17 = vadd.f32 %v1502_v16, %v1497_v14 }
 0x3c7   : > { %1504 = vst [vmem:[%s733_s2] sm:$0x3] %v1503_v17 }
 0x3c8 PF: > { %s33_s23 = sadd.s32 1, %s1823_s23  }
 0x3c9   : > { %p30_p7 = scmp.ge.s32.totalorder %s33_s23, 4  }
 0x3cb   :  { %32 = sbr.rel (!%p30_p7) target bundleno = 10 (0xa), region = 153 }
 0x3d0   :  { %1524 = vsyncpa [#allocation4], 1 }
 0x3d1   :  { %1526 = vsyncpa [#allocation4 + $0x1], 1 }

</bundles_post_ra>
